<compile_context>
chip_gen: v7x
topology: tpu7x:2x2x1
jax: 0.10.0
libtpu: 0.0.40
codegen_flags: <defaults>
</compile_context>

<pallas_src>
import functools

import jax
import jax.numpy as jnp
from jax.experimental import pallas as pl
from jax.experimental.pallas import tpu as pltpu

_EPS = 1e-20
_LANES = 512                # lane-dense last dim (multiple of 128)
_MAX_ROWS_PER_BLOCK = 512   # (512, 512) f32 block = 1 MiB per array


def _gumbel_sigmoid_kernel(x_ref, u1_ref, u2_ref, o_ref, *, inv_T, hard):
    """Training path: g = log(log(u2+eps)/log(u1+eps)+eps); sigmoid((g+x)/T)."""
    x = x_ref[...].astype(jnp.float32)
    u1 = u1_ref[...]
    u2 = u2_ref[...]
    g = jnp.log(jnp.log(u2 + _EPS) / jnp.log(u1 + _EPS) + _EPS)
    y = (g + x) * jnp.float32(inv_T)
    if hard:
        # Forward value of the straight-through estimator is round(sigmoid(y)),
        # which equals 1.0 iff y > 0 (round-half-even at y == 0 gives 0.0).
        s = jnp.where(y > 0.0, jnp.float32(1.0), jnp.float32(0.0))
    else:
        s = jax.nn.sigmoid(y)
    o_ref[...] = s.astype(o_ref.dtype)


def _sigmoid_kernel(x_ref, o_ref):
    """Eval path: plain sigmoid."""
    o_ref[...] = jax.nn.sigmoid(x_ref[...].astype(jnp.float32)).astype(o_ref.dtype)


def _pad_to_slab(flat, lanes, max_rows):
    """Pad a flat vector into a lane-dense (rows, lanes) slab with rows a whole
    number of block_rows, so every block is full (no masked partial stores)."""
    total = flat.shape[0]
    rows = pl.cdiv(total, lanes)
    rows = pl.cdiv(rows, 8) * 8                       # sublane multiple
    block_rows = min(rows, max_rows)
    rows = pl.cdiv(rows, block_rows) * block_rows     # whole number of blocks
    padded = rows * lanes
    if padded > total:
        flat = jnp.pad(flat, (0, padded - total))
    return flat.reshape(rows, lanes), block_rows


class GumbelSigmoidLayer:
    """JAX/Pallas port of the PyTorch GumbelSigmoidLayer (forward only)."""

    def __init__(self, hard=False, T=1.0):
        self.hard = hard
        self.T = T
        self.training = True  # mimic nn.Module.train()/eval()

    def eval(self):
        self.training = False
        return self

    def train(self):
        self.training = True
        return self

    def __call__(self, x, seed=0):
        orig_shape = x.shape
        total = x.size

        x2, block_rows = _pad_to_slab(x.reshape(-1), _LANES, _MAX_ROWS_PER_BLOCK)
        rows, lanes = x2.shape
        grid = (rows // block_rows,)
        spec = pl.BlockSpec((block_rows, lanes), lambda i: (i, 0))
        cparams = pltpu.CompilerParams(dimension_semantics=("parallel",))

        if self.training:
            # TODO(synk): in-kernel pltpu.prng_random_bits would avoid the two
            # extra HBM reads per element, but it has no interpret/CPU lowering
            # in this environment, so the uniforms are drawn in the wrapper.
            k1, k2 = jax.random.split(jax.random.PRNGKey(seed))
            u1 = jax.random.uniform(k1, (rows, lanes), dtype=jnp.float32)
            u2 = jax.random.uniform(k2, (rows, lanes), dtype=jnp.float32)

            kernel = functools.partial(
                _gumbel_sigmoid_kernel,
                inv_T=1.0 / float(self.T),
                hard=bool(self.hard),
            )
            out2 = pl.pallas_call(
                kernel,
                out_shape=jax.ShapeDtypeStruct((rows, lanes), x.dtype),
                grid=grid,
                in_specs=[spec, spec, spec],
                out_specs=spec,
                compiler_params=cparams,
            )(x2, u1, u2)
        else:
            out2 = pl.pallas_call(
                _sigmoid_kernel,
                out_shape=jax.ShapeDtypeStruct((rows, lanes), x.dtype),
                grid=grid,
                in_specs=[spec],
                out_specs=spec,
                compiler_params=cparams,
            )(x2)

        return out2.reshape(-1)[:total].reshape(orig_shape)


if __name__ == "__main__":
    key = jax.random.PRNGKey(0)
    x = jax.random.normal(key, (2, 4, 16, 16), dtype=jnp.float32)

    # Training path (soft gumbel-sigmoid sampling) -> values in [0, 1].
    layer = GumbelSigmoidLayer(hard=False, T=1.0)
    y_train = jax.block_until_ready(layer(x, seed=0))
    assert y_train.shape == x.shape
    assert bool(jnp.all(jnp.isfinite(y_train)))
    assert bool(jnp.all((y_train >= 0.0) & (y_train <= 1.0)))

    # Training path with hard (straight-through) samples -> values in {0, 1}.
    layer_hard = GumbelSigmoidLayer(hard=True, T=1.0)
    y_hard = jax.block_until_ready(layer_hard(x, seed=0))
    assert y_hard.shape == x.shape
    assert bool(jnp.all((y_hard == 0.0) | (y_hard == 1.0)))

    # Eval path: must match plain sigmoid (up to fp tolerance).
    y_eval = jax.block_until_ready(layer.eval()(x))
    ref = jax.nn.sigmoid(x)
    assert bool(jnp.allclose(y_eval, ref, atol=1e-6)), "eval path mismatch"

    print("KERNEL_OK")
</pallas_src>

<mosaic_0001>
module attributes {stable_mosaic.version = 11 : i64} {
  func.func @_gumbel_sigmoid_kernel(%arg0: i32, %arg1: memref<8x512xf32, #tpu.memory_space<vmem>>, %arg2: memref<8x512xf32, #tpu.memory_space<vmem>>, %arg3: memref<8x512xf32, #tpu.memory_space<vmem>>, %arg4: memref<8x512xf32, #tpu.memory_space<vmem>>) attributes {dimension_semantics = [#tpu.dimension_semantics<parallel>], iteration_bounds = array<i64: 1>, scalar_prefetch = 0 : i64, scratch_operands = 0 : i64, tpu.core_type = #tpu.core_type<tc>, window_params = [{transform_indices = @transform_0, window_bounds = array<i64: 8, 512>}, {transform_indices = @transform_1, window_bounds = array<i64: 8, 512>}, {transform_indices = @transform_2, window_bounds = array<i64: 8, 512>}, {transform_indices = @transform_3, window_bounds = array<i64: 8, 512>}]} {
    %c0 = arith.constant 0 : index
    %c0_0 = arith.constant 0 : index
    %0 = vector.load %arg1[%c0, %c0_0] : memref<8x512xf32, #tpu.memory_space<vmem>>, vector<8x512xf32>
    %c0_1 = arith.constant 0 : index
    %c0_2 = arith.constant 0 : index
    %1 = vector.load %arg2[%c0_1, %c0_2] : memref<8x512xf32, #tpu.memory_space<vmem>>, vector<8x512xf32>
    %c0_3 = arith.constant 0 : index
    %c0_4 = arith.constant 0 : index
    %2 = vector.load %arg3[%c0_3, %c0_4] : memref<8x512xf32, #tpu.memory_space<vmem>>, vector<8x512xf32>
    %cst = arith.constant 9.99999968E-21 : f32
    %3 = vector.broadcast %cst : f32 to vector<8x512xf32>
    %4 = arith.addf %2, %3 : vector<8x512xf32>
    %5 = math.log %4 : vector<8x512xf32>
    %cst_5 = arith.constant 9.99999968E-21 : f32
    %6 = vector.broadcast %cst_5 : f32 to vector<8x512xf32>
    %7 = arith.addf %1, %6 : vector<8x512xf32>
    %8 = math.log %7 : vector<8x512xf32>
    %9 = arith.divf %5, %8 : vector<8x512xf32>
    %cst_6 = arith.constant 9.99999968E-21 : f32
    %10 = vector.broadcast %cst_6 : f32 to vector<8x512xf32>
    %11 = arith.addf %9, %10 : vector<8x512xf32>
    %12 = math.log %11 : vector<8x512xf32>
    %13 = arith.addf %12, %0 : vector<8x512xf32>
    %cst_7 = arith.constant 1.000000e+00 : f32
    %14 = vector.broadcast %cst_7 : f32 to vector<8x512xf32>
    %15 = arith.mulf %13, %14 : vector<8x512xf32>
    %16 = arith.negf %15 : vector<8x512xf32>
    %17 = math.exp %16 : vector<8x512xf32>
    %cst_8 = arith.constant 1.000000e+00 : f32
    %18 = vector.broadcast %cst_8 : f32 to vector<8x512xf32>
    %19 = arith.addf %18, %17 : vector<8x512xf32>
    %20 = arith.divf %18, %19 : vector<8x512xf32>
    %c0_9 = arith.constant 0 : index
    %c0_10 = arith.constant 0 : index
    %21 = vector.load %arg4[%c0_9, %c0_10] : memref<8x512xf32, #tpu.memory_space<vmem>>, vector<8x512xf32>
    tpu.vector_store %arg4[%c0_9, %c0_10], %20 {strides = array<i32>} : memref<8x512xf32, #tpu.memory_space<vmem>>, vector<8x512xf32>,
    return
  }
  func.func @transform_0(%arg0: i32) -> (i32, i32) {
    %c0_i32 = arith.constant 0 : i32
    %c0_i32_0 = arith.constant 0 : i32
    return %arg0, %c0_i32 : i32, i32
  }
  func.func @transform_1(%arg0: i32) -> (i32, i32) {
    %c0_i32 = arith.constant 0 : i32
    %c0_i32_0 = arith.constant 0 : i32
    return %arg0, %c0_i32 : i32, i32
  }
  func.func @transform_2(%arg0: i32) -> (i32, i32) {
    %c0_i32 = arith.constant 0 : i32
    %c0_i32_0 = arith.constant 0 : i32
    return %arg0, %c0_i32 : i32, i32
  }
  func.func @transform_3(%arg0: i32) -> (i32, i32) {
    %c0_i32 = arith.constant 0 : i32
    %c0_i32_0 = arith.constant 0 : i32
    return %arg0, %c0_i32 : i32, i32
  }
}

</mosaic_0001>

<bundles_post_ra>
// kernel: tpu_custom_call.1
= control target key start
LH: loop header
LB: loop body
LE: loop exit
PB: predicated region body
PF: predicated region fallthrough
CT: control target
= control target key end

     0   :  { %8 = vsyncpa [#allocation3], 0  ;;  %s376_s0 = inlined_call_operand.hbm [shape: f32[8,512], index: 0, kind: input, shape index: {}]   ;;  %s377_s1 = inlined_call_operand.hbm [shape: f32[8,512], index: 1, kind: input, shape index: {}]   ;;  %s378_s2 = inlined_call_operand.hbm [shape: f32[8,512], index: 2, kind: input, shape index: {}]   ;;  %s379_s3 = inlined_call_operand.hbm [shape: f32[8,512], index: 3, kind: output, shape index: {}]  }
   0x1   :  { %9 = vsyncpa [#allocation6], 0 }
   0x2   :  { %10 = vsyncpa [#allocation4], 0  ;;  %s304_s12 = smov [#allocation5]   ;;  %s305_s14 = smov [#allocation2]  }
   0x3   :  { %s27_s13 = sshll.u32 %s304_s12, 4  ;;  %s17_s15 = sshll.u32 %s305_s14, 4  ;;  %s28_s13 = int_to_ptr.vmem [resolvable:$true] %s27_s13  ;;  %s18_s15 = int_to_ptr.vmem [resolvable:$true] %s17_s15 }
   0x4   :  { %s210_s18 = scalar_lea.hbm %s377_s1, 512 }
   0x5   :  { %p211_p0 = scmp.ne.s32.totalorder %s377_s1, %s210_s18  ;;  %p214_p1 = scmp.lt.u32.totalorder %s210_s18, %s377_s1 }
   0x7   :  { %p216_p2 = pnand %p214_p1, %p211_p0 }
   0x9   :  { %219 = shalt.err (!%p216_p2)
}
   0xa   :  { %s220_s23 = scalar_lea.vmem %s28_s13, 512  ;;  %p225_p4 = scmp.lt.s32.totalorder %s28_s13, %s28_s13 }
   0xb   :  { %p221_p3 = scmp.ne.s32.totalorder %s28_s13, %s220_s23  ;;  %p226_p5 = scmp.lt.s32.totalorder %s220_s23, %s220_s23 }
   0xd   :  { %p227_p6 = por %p226_p5, %p225_p4 }
   0xf   :  { %p228_p7 = pnand %p227_p6, %p221_p3 }
  0x11   :  { %231 = shalt.err (!%p228_p7)
}
  0x12   :  { %30 = dma.hbm_to_vmem [thread:$0]  %s377_s1, 512, %s28_s13, [#allocation6]  }
  0x13   :  { %s232_s28 = scalar_lea.hbm %s376_s0, 512 }
  0x14   :  { %p233_p8 = scmp.ne.s32.totalorder %s376_s0, %s232_s28  ;;  %p236_p9 = scmp.lt.u32.totalorder %s232_s28, %s376_s0 }
  0x16   :  { %p238_p10 = pnand %p236_p9, %p233_p8 }
  0x18   :  { %241 = shalt.err (!%p238_p10)
}
  0x19   :  { %s242_s6 = scalar_lea.vmem %s18_s15, 512  ;;  %p247_p12 = scmp.lt.s32.totalorder %s18_s15, %s18_s15 }
  0x1a   :  { %p243_p11 = scmp.ne.s32.totalorder %s18_s15, %s242_s6  ;;  %p248_p13 = scmp.lt.s32.totalorder %s242_s6, %s242_s6 }
  0x1c   :  { %p249_p0 = por %p248_p13, %p247_p12 }
  0x1e   :  { %p250_p1 = pnand %p249_p0, %p243_p11 }
  0x20   :  { %253 = shalt.err (!%p250_p1)
}
  0x21   :  { %20 = dma.hbm_to_vmem [thread:$0]  %s376_s0, 512, %s18_s15, [#allocation3]  }
  0x22   :  { %s306_s8 = smov [#allocation7]   ;;  %s254_s12 = scalar_lea.hbm %s378_s2, 512 }
  0x23   :  { %s37_s9 = sshll.u32 %s306_s8, 4  ;;  %p255_p2 = scmp.ne.s32.totalorder %s378_s2, %s254_s12  ;;  %s38_s9 = int_to_ptr.vmem [resolvable:$true] %s37_s9 }
  0x24   :  { %p258_p3 = scmp.lt.u32.totalorder %s254_s12, %s378_s2 }
  0x26   :  { %p260_p4 = pnand %p258_p3, %p255_p2 }
  0x28   :  { %263 = shalt.err (!%p260_p4)
}
  0x29   :  { %s264_s18 = scalar_lea.vmem %s38_s9, 512  ;;  %p269_p6 = scmp.lt.s32.totalorder %s38_s9, %s38_s9 }
  0x2a   :  { %p265_p5 = scmp.ne.s32.totalorder %s38_s9, %s264_s18  ;;  %p270_p7 = scmp.lt.s32.totalorder %s264_s18, %s264_s18 }
  0x2c   :  { %p271_p8 = por %p270_p7, %p269_p6 }
  0x2e   :  { %p272_p9 = pnand %p271_p8, %p265_p5 }
  0x30   :  { %275 = shalt.err (!%p272_p9)
}
  0x31   :  { %40 = dma.hbm_to_vmem [thread:$0]  %s378_s2, 512, %s38_s9, [#allocation6]  }
  0x32   :  { %298 = dma.done.wait [#allocation3], 512  }
  0x33   :  { %299 = vsyncadd [#allocation3], 4294966784 }
  0x34   :  { %300 = dma.done.wait [#allocation6], 1024  }
  0x35   :  { %301 = vsyncadd [#allocation6], 4294966272  ;;  %v54_v0 = vld [vmem:[#allocation5] sm:$0xff]  ;;  %v55_v2 = vld [vmem:[#allocation5 + $0x8] sm:$0xff]  ;;  %s307_s2 = smov [#allocation8]  }
  0x36   :  { %v74_v1 = vadd.f32 1e-20, %v54_v0  ;;  %v75_v3 = vadd.f32 1e-20, %v55_v2  ;;  %v56_v4 = vld [vmem:[#allocation5 + $0x10] sm:$0xff]  ;;  %v58_v5 = vld [vmem:[#allocation7] sm:$0xff] }
  0x37   :  { %v76_v6 = vadd.f32 1e-20, %v56_v4  ;;  %v57_v7 = vld [vmem:[#allocation5 + $0x18] sm:$0xff]  ;;  %v59_v8 = vld [vmem:[#allocation7 + $0x8] sm:$0xff]  ;;  %v62_v10 = vadd.f32 1e-20, %v58_v5 }
  0x38   :  { %162 = vlog2.f32 %v74_v1  ;;  %v77_v9 = vadd.f32 1e-20, %v57_v7  ;;  %v60_v11 = vld [vmem:[#allocation7 + $0x10] sm:$0xff]  ;;  %v63_v12 = vadd.f32 1e-20, %v59_v8  ;;  %v61_v13 = vld [vmem:[#allocation7 + $0x18] sm:$0xff] }
  0x39   :  { %164 = vlog2.f32 %v75_v3  ;;  %v64_v14 = vadd.f32 1e-20, %v60_v11  ;;  %v65_v15 = vadd.f32 1e-20, %v61_v13  ;;  %v50_v45 = vld [vmem:[#allocation2] sm:$0xff]  ;;  %v51_v48 = vld [vmem:[#allocation2 + $0x8] sm:$0xff] }
  0x3a   :  { %166 = vlog2.f32 %v76_v6  ;;  %v52_v52 = vld [vmem:[#allocation2 + $0x10] sm:$0xff]  ;;  %v53_v57 = vld [vmem:[#allocation2 + $0x18] sm:$0xff]  ;;  %s144_s19 = sshll.u32 %s307_s2, 4  ;;  %s145_s19 = int_to_ptr.vmem [resolvable:$true] %s144_s19 }
  0x3b   :  { %168 = vlog2.f32 %v77_v9  ;;  %s276_s20 = scalar_lea.vmem %s145_s19, 512  ;;  %p281_p11 = scmp.lt.s32.totalorder %s145_s19, %s145_s19 }
  0x3c   :  { %170 = vlog2.f32 %v62_v10  ;;  %p277_p10 = scmp.ne.s32.totalorder %s145_s19, %s276_s20  ;;  %p282_p12 = scmp.lt.s32.totalorder %s276_s20, %s276_s20 }
  0x3d   :  { %172 = vlog2.f32 %v63_v12 }
  0x3e   :  { %174 = vlog2.f32 %v64_v14  ;;  %p283_p13 = por %p282_p12, %p281_p11 }
  0x3f   :  { %176 = vlog2.f32 %v65_v15 }
  0x40   :  { %p284_p0 = pnand %p283_p13, %p277_p10 }
  0x42   :  { %v163_v16 = vpop.eup %162 }
  0x43   :  { %v79_v17 = vmul.f32 0.6931472, %v163_v16  ;;  %v165_v18 = vpop.eup %164 }
  0x44   :  { %v81_v19 = vmul.f32 0.6931472, %v165_v18  ;;  %v167_v20 = vpop.eup %166 }
  0x45   :  { %178 = vrcp.f32 %v79_v17  ;;  %v83_v21 = vmul.f32 0.6931472, %v167_v20  ;;  %v169_v22 = vpop.eup %168 }
  0x46   :  { %180 = vrcp.f32 %v81_v19  ;;  %v171_v23 = vpop.eup %170  ;;  %v85_v24 = vmul.f32 0.6931472, %v169_v22 }
  0x47   :  { %182 = vrcp.f32 %v83_v21  ;;  %v173_v25 = vpop.eup %172  ;;  %v67_v26 = vmul.f32 0.6931472, %v171_v23 }
  0x48   :  { %184 = vrcp.f32 %v85_v24  ;;  %v175_v27 = vpop.eup %174  ;;  %v69_v29 = vmul.f32 0.6931472, %v173_v25 }
  0x49   :  { %v177_v28 = vpop.eup %176  ;;  %v71_v32 = vmul.f32 0.6931472, %v175_v27 }
  0x4a   :  { %v73_v36 = vmul.f32 0.6931472, %v177_v28 }
  0x4f   :  { %v179_v30 = vpop.eup %178 }
  0x50   :  { %v87_v31 = vmul.f32 %v179_v30, %v67_v26  ;;  %v181_v33 = vpop.eup %180 }
  0x51   :  { %v89_v35 = vmul.f32 %v181_v33, %v69_v29  ;;  %v183_v37 = vpop.eup %182 }
  0x52   :  { %v94_v34 = vadd.f32 1e-20, %v87_v31  ;;  %v91_v39 = vmul.f32 %v183_v37, %v71_v32  ;;  %v185_v40 = vpop.eup %184 }
  0x53   :  { %v95_v38 = vadd.f32 1e-20, %v89_v35  ;;  %v93_v42 = vmul.f32 %v185_v40, %v73_v36 }
  0x54   :  { %186 = vlog2.f32 %v94_v34  ;;  %v96_v41 = vadd.f32 1e-20, %v91_v39 }
  0x55   :  { %188 = vlog2.f32 %v95_v38  ;;  %v97_v43 = vadd.f32 1e-20, %v93_v42 }
  0x56   :  { %190 = vlog2.f32 %v96_v41 }
  0x57   :  { %192 = vlog2.f32 %v97_v43 }
  0x5e   :  { %v187_v44 = vpop.eup %186 }
  0x5f   :  { %v99_v46 = vmul.f32 0.6931472, %v187_v44  ;;  %v189_v47 = vpop.eup %188 }
  0x60   :  { %v101_v50 = vmul.f32 0.6931472, %v189_v47  ;;  %v191_v51 = vpop.eup %190 }
  0x61   :  { %v106_v49 = vadd.f32 %v99_v46, %v50_v45  ;;  %v103_v55 = vmul.f32 0.6931472, %v191_v51  ;;  %v193_v56 = vpop.eup %192 }
  0x62   :  { %v107_v54 = vadd.f32 %v101_v50, %v51_v48  ;;  %v105_v60 = vmul.f32 0.6931472, %v193_v56 }
  0x63   :  { %v154_v53 = vmul.f32 -1.442695, %v106_v49  ;;  %v108_v59 = vadd.f32 %v103_v55, %v52_v52 }
  0x64   :  { %v155_v58 = vmul.f32 -1.442695, %v107_v54  ;;  %v109_v62 = vadd.f32 %v105_v60, %v53_v57 }
  0x65   :  { %194 = vpow2.f32 %v154_v53  ;;  %v156_v61 = vmul.f32 -1.442695, %v108_v59 }
  0x66   :  { %196 = vpow2.f32 %v155_v58  ;;  %v157_v63 = vmul.f32 -1.442695, %v109_v62 }
  0x67   :  { %198 = vpow2.f32 %v156_v61 }
  0x68   :  { %200 = vpow2.f32 %v157_v63 }
  0x6f   :  { %v195_v0 = vpop.eup %194 }
  0x70   :  { %v122_v1 = vadd.f32 1.0, %v195_v0  ;;  %v197_v2 = vpop.eup %196 }
  0x71   :  { %v123_v3 = vadd.f32 1.0, %v197_v2  ;;  %v199_v4 = vpop.eup %198 }
  0x72   :  { %202 = vrcp.f32 %v122_v1  ;;  %v124_v5 = vadd.f32 1.0, %v199_v4  ;;  %v201_v6 = vpop.eup %200 }
  0x73   :  { %204 = vrcp.f32 %v123_v3  ;;  %v125_v7 = vadd.f32 1.0, %v201_v6 }
  0x74   :  { %206 = vrcp.f32 %v124_v5 }
  0x75   :  { %208 = vrcp.f32 %v125_v7 }
  0x7c   :  { %v203_v8 = vpop.eup %202 }
  0x7d   :  { %134 = vst [vmem:[#allocation8] sm:$0xff] %v203_v8  ;;  %v205_v9 = vpop.eup %204 }
  0x7e   :  { %135 = vst [vmem:[#allocation8 + $0x8] sm:$0xff] %v205_v9  ;;  %v207_v10 = vpop.eup %206 }
  0x7f   :  { %136 = vst [vmem:[#allocation8 + $0x10] sm:$0xff] %v207_v10  ;;  %v209_v11 = vpop.eup %208 }
  0x80   :  { %137 = vst [vmem:[#allocation8 + $0x18] sm:$0xff] %v209_v11 }
  0x81   :  { %287 = shalt.err (!%p284_p0)
}
  0x82   :  { %s288_s23 = scalar_lea.hbm %s379_s3, 512 }
  0x83   :  { %p289_p1 = scmp.ne.s32.totalorder %s379_s3, %s288_s23  ;;  %p292_p2 = scmp.lt.u32.totalorder %s288_s23, %s379_s3 }
  0x85   :  { %p294_p3 = pnand %p292_p2, %p289_p1 }
  0x87   :  { %297 = shalt.err (!%p294_p3)
}
  0x88   :  { %147 = dma.vmem_to_hbm [thread:$0]  %s145_s19, 512, %s379_s3, [#allocation4]  }
  0x89   :  { %302 = dma.done.wait [#allocation4], 512  }
  0x8a   :  { %303 = vsyncadd [#allocation4], 4294966784 }
  0x8b   :  { %151 = vsyncpa [#allocation3], 1 }
  0x8c   :  { %152 = vsyncpa [#allocation6], 1 }
  0x8d   :  { %153 = vsyncpa [#allocation4], 1 }

</bundles_post_ra>
